<compile_context>
chip_gen: v7x
topology: tpu7x:2x2x1
jax: 0.10.0
libtpu: 0.0.40
codegen_flags: <defaults>
</compile_context>

<pallas_src>
import functools

import jax
import jax.numpy as jnp
from jax.experimental import pallas as pl
from jax.experimental.pallas import tpu as pltpu


def _round_up(x, m):
    return (x + m - 1) // m * m


# -----------------------------------------------------------------------------
# Fused kernel: (conv+BN) transposed matmul -> ReLU -> global-avg-pool
#               accumulation -> (at last M tile) last_linear.
#
# Grid: (B, Mp // TM); batch 'parallel', M 'arbitrary' (reduction, innermost).
#   patches_ref: (Kp, TM)  bf16  (batch dim squeezed; M on lanes -> lane-dense)
#   w_ref:       (Cp, Kp)  bf16  (BN scale folded in; Cout padded to Cp=128)
#   shift_ref:   (Cp, 1)   f32   (BN shift, zero-padded)
#   lin_w_ref:   (Cp, NCp) f32   (last_linear W.T, zero-padded)
#   lin_b_ref:   (1, NCp)  f32
#   out_ref:     (1, NCp)  f32   (lane-dense logits row for this batch elem)
#   acc_ref:     (Cp, 1)   f32   scratch: running sum of relu(features)
# -----------------------------------------------------------------------------
def _fused_stem_head_kernel(patches_ref, w_ref, shift_ref, lin_w_ref,
                            lin_b_ref, out_ref, acc_ref, *, inv_ohw, pad_cols):
    m = pl.program_id(1)

    @pl.when(m == 0)
    def _():
        acc_ref[...] = jnp.zeros_like(acc_ref)

    # Conv as transposed im2col matmul (bf16 x bf16 -> f32 on the MXU), BN
    # scale already folded into w; add shift (lane broadcast), ReLU.
    y = jnp.dot(w_ref[...], patches_ref[...],
                preferred_element_type=jnp.float32)            # (Cp, TM)
    y = jnp.maximum(y + shift_ref[...], 0.0)

    # Global-average-pool: accumulate the lane-axis sum; scale at finalize.
    acc_ref[...] += jnp.sum(y, axis=1, keepdims=True)          # (Cp, 1)

    @pl.when(m == pl.num_programs(1) - 1)
    def _():
        # Padded M columns (all-zero patches) each contributed exactly
        # relu(shift); remove them once here instead of masking every step.
        pooled = (acc_ref[...]
                  - pad_cols * jnp.maximum(shift_ref[...], 0.0)) * inv_ohw
        # Dropout is identity in eval mode.  last_linear via broadcast-multiply
        # + sublane reduce (avoids tiny transposes / N=1 matmuls).
        logits = (jnp.sum(lin_w_ref[...] * pooled, axis=0, keepdims=True)
                  + lin_b_ref[...])                            # (1, NCp)
        out_ref[...] = logits


def pnasnet_stem_head(x_nchw, conv_w, bn_gamma, bn_beta, bn_mean, bn_var,
                      lin_w, lin_b, *, stride=2, eps=1e-3, tm=8192):
    """Conv2d(3x3, stride=2, no pad, no bias) + BN(eval) + ReLU + avgpool
    + Dropout(eval) + Linear, fused into a single Pallas kernel."""
    B, Cin, H, W = x_nchw.shape
    Cout, _, kh, kw = conv_w.shape
    num_classes = lin_w.shape[0]
    OH = (H - kh) // stride + 1
    OW = (W - kw) // stride + 1
    OHW = OH * OW
    K = kh * kw * Cin

    # ---- im2col (XLA glue inside the same jit), built directly in the
    # (B, K, M) orientation: K (tap-major, Cin-minor) on sublanes, M on lanes.
    taps = []
    for i in range(kh):
        for j in range(kw):
            taps.append(
                x_nchw[:, :, i:i + stride * OH:stride, j:j + stride * OW:stride])
    patches_t = jnp.stack(taps, axis=1)            # (B, kh*kw, Cin, OH, OW)
    patches_t = patches_t.reshape(B, K, OHW)       # K = tap*Cin + cin

    # Pad K (27 -> 32) and M (OHW -> multiple of the lane-dense tile).
    Kp = _round_up(K, 32)
    Cp = _round_up(Cout, 128)
    NCp = _round_up(num_classes, 128)
    TM = min(_round_up(tm, 128), _round_up(OHW, 128))
    Mp = _round_up(OHW, TM)
    patches_t = jnp.pad(patches_t, ((0, 0), (0, Kp - K), (0, Mp - OHW)))
    patches_t = patches_t.astype(jnp.bfloat16)

    # ---- fold BN (eval) into the conv weight (transposed: (Cout, K)).
    scale = bn_gamma / jnp.sqrt(bn_var + eps)                        # (Cout,)
    shift = bn_beta - bn_mean * scale                                # (Cout,)
    # (Cout, Cin, kh, kw) -> (Cout, kh, kw, Cin) -> (Cout, K): matches patches.
    w_t = jnp.transpose(conv_w, (0, 2, 3, 1)).reshape(Cout, K) * scale[:, None]
    w_t_p = jnp.pad(w_t, ((0, Cp - Cout), (0, Kp - K))).astype(jnp.bfloat16)
    shift_p = jnp.pad(shift, (0, Cp - Cout)).reshape(Cp, 1).astype(jnp.float32)

    # ---- last_linear W.T / b, zero-padded (padded rows/cols contribute 0).
    lin_w_p = jnp.pad(jnp.transpose(lin_w, (1, 0)),
                      ((0, Cp - Cout), (0, NCp - num_classes))).astype(jnp.float32)
    lin_b_p = jnp.pad(lin_b, (0, NCp - num_classes)).reshape(1, NCp).astype(jnp.float32)

    kernel = functools.partial(_fused_stem_head_kernel,
                               inv_ohw=1.0 / OHW,
                               pad_cols=float(Mp - OHW))

    logits_p = pl.pallas_call(
        kernel,
        out_shape=jax.ShapeDtypeStruct((B, 1, NCp), jnp.float32),
        grid=(B, Mp // TM),
        in_specs=[
            pl.BlockSpec((None, Kp, TM), lambda b, m: (b, 0, m)),
            pl.BlockSpec((Cp, Kp), lambda b, m: (0, 0)),
            pl.BlockSpec((Cp, 1), lambda b, m: (0, 0)),
            pl.BlockSpec((Cp, NCp), lambda b, m: (0, 0)),
            pl.BlockSpec((1, NCp), lambda b, m: (0, 0)),
        ],
        out_specs=pl.BlockSpec((None, 1, NCp), lambda b, m: (b, 0, 0)),
        scratch_shapes=[pltpu.VMEM((Cp, 1), jnp.float32)],
        compiler_params=pltpu.CompilerParams(
            dimension_semantics=("parallel", "arbitrary"),
            vmem_limit_bytes=48 * 1024 * 1024),
    )(patches_t, w_t_p, shift_p, lin_w_p, lin_b_p)

    return logits_p[:, 0, :num_classes]


# -----------------------------------------------------------------------------
# Module wrapper: PNASNet5Larget.forward (eval mode, output_trans_func=None).
# -----------------------------------------------------------------------------
@jax.jit
def pnasnet5larget_forward(x_nchw, params):
    return pnasnet_stem_head(
        x_nchw.astype(jnp.float32),
        params["conv0_w"],
        params["bn_gamma"], params["bn_beta"],
        params["bn_mean"], params["bn_var"],
        params["lin_w"], params["lin_b"],
    )


def _reference_forward(x_nchw, params, *, stride=2, eps=1e-3):
    """Pure-JAX reference for correctness checking."""
    x = jnp.transpose(x_nchw, (0, 2, 3, 1)).astype(jnp.float32)    # NHWC
    B, H, W, Cin = x.shape
    conv_w = params["conv0_w"]
    Cout, _, kh, kw = conv_w.shape
    OH = (H - kh) // stride + 1
    OW = (W - kw) // stride + 1
    cols = []
    for i in range(kh):
        for j in range(kw):
            cols.append(x[:, i:i + stride * OH:stride, j:j + stride * OW:stride, :])
    patches = jnp.stack(cols, axis=3).reshape(B, OH * OW, kh * kw * Cin)
    w_mat = jnp.transpose(conv_w, (2, 3, 1, 0)).reshape(kh * kw * Cin, Cout)
    y = jnp.einsum('bmk,kc->bmc', patches, w_mat)
    scale = params["bn_gamma"] / jnp.sqrt(params["bn_var"] + eps)
    shift = params["bn_beta"] - params["bn_mean"] * scale
    y = y * scale + shift
    pooled = jnp.mean(jnp.maximum(y, 0.0), axis=1)                 # (B, Cout)
    return pooled @ params["lin_w"].T + params["lin_b"]


def init_params(key, cin=3, cout=96, num_classes=10):
    ks = jax.random.split(key, 4)
    conv0_w = jax.random.normal(ks[0], (cout, cin, 3, 3), jnp.float32) * 0.1
    bn_gamma = jnp.ones((cout,), jnp.float32)
    bn_beta = jnp.zeros((cout,), jnp.float32)
    bn_mean = jax.random.normal(ks[1], (cout,), jnp.float32) * 0.01
    bn_var = jnp.ones((cout,), jnp.float32)
    # Fine-tuned last_linear (in_features = stem channels in this reduced script).
    lin_w = jax.random.normal(ks[2], (num_classes, cout), jnp.float32) * 0.05
    lin_b = jax.random.normal(ks[3], (num_classes,), jnp.float32) * 0.01
    return dict(conv0_w=conv0_w, bn_gamma=bn_gamma, bn_beta=bn_beta,
                bn_mean=bn_mean, bn_var=bn_var, lin_w=lin_w, lin_b=lin_b)


if __name__ == "__main__":
    key = jax.random.PRNGKey(0)
    k_x, k_p = jax.random.split(key)

    batch, cin, hw = 2, 3, 16          # small stand-in for (331, 331, 3)
    num_classes = 10
    x = jax.random.normal(k_x, (batch, cin, hw, hw), jnp.float32)  # NCHW
    params = init_params(k_p, cin=cin, cout=96, num_classes=num_classes)

    out = pnasnet5larget_forward(x, params)
    out = jax.block_until_ready(out)
    assert out.shape == (batch, num_classes), out.shape
    ref = _reference_forward(x, params)
    assert jnp.allclose(out, ref, atol=5e-2, rtol=5e-2), (
        float(jnp.max(jnp.abs(out - ref))))

    # Second check: larger spatial extent + small tm to exercise the multi-step
    # M accumulation and the finalize padding correction.
    x2 = jax.random.normal(jax.random.PRNGKey(1), (1, cin, 67, 67), jnp.float32)
    out2 = pnasnet_stem_head(
        x2, params["conv0_w"], params["bn_gamma"], params["bn_beta"],
        params["bn_mean"], params["bn_var"], params["lin_w"], params["lin_b"],
        tm=256)
    out2 = jax.block_until_ready(out2)
    ref2 = _reference_forward(x2, params)
    assert jnp.allclose(out2, ref2, atol=5e-2, rtol=5e-2), (
        float(jnp.max(jnp.abs(out2 - ref2))))

    print("KERNEL_OK")
</pallas_src>

<mosaic_0001>
module attributes {stable_mosaic.version = 11 : i64} {
  func.func @_fused_stem_head_kernel(%arg0: i32, %arg1: i32, %arg2: memref<1x32x128xbf16, #tpu.memory_space<vmem>>, %arg3: memref<128x32xbf16, #tpu.memory_space<vmem>>, %arg4: memref<128x1xf32, #tpu.memory_space<vmem>>, %arg5: memref<128x128xf32, #tpu.memory_space<vmem>>, %arg6: memref<1x128xf32, #tpu.memory_space<vmem>>, %arg7: memref<1x1x128xf32, #tpu.memory_space<vmem>>, %arg8: memref<128x1xf32, #tpu.memory_space<vmem>>) attributes {dimension_semantics = [#tpu.dimension_semantics<parallel>, #tpu.dimension_semantics<arbitrary>], iteration_bounds = array<i64: 2, 1>, scalar_prefetch = 0 : i64, scratch_operands = 1 : i64, tpu.core_type = #tpu.core_type<tc>, window_params = [{transform_indices = @transform_0, window_bounds = array<i64: 1, 32, 128>}, {pipeline_mode = #tpu.pipeline_mode<synchronous>, transform_indices = @transform_1, window_bounds = array<i64: 128, 32>}, {pipeline_mode = #tpu.pipeline_mode<synchronous>, transform_indices = @transform_2, window_bounds = array<i64: 128, 1>}, {pipeline_mode = #tpu.pipeline_mode<synchronous>, transform_indices = @transform_3, window_bounds = array<i64: 128, 128>}, {pipeline_mode = #tpu.pipeline_mode<synchronous>, transform_indices = @transform_4, window_bounds = array<i64: 1, 128>}, {transform_indices = @transform_5, window_bounds = array<i64: 1, 1, 128>}]} {
    %c0_i32 = arith.constant 0 : i32
    %0 = arith.cmpi eq, %arg1, %c0_i32 : i32
    %1 = arith.extui %0 : i1 to i32
    %c0_i32_0 = arith.constant 0 : i32
    %2 = arith.cmpi ne, %1, %c0_i32_0 : i32
    scf.if %2 {
      %cst_15 = arith.constant 0.000000e+00 : f32
      %20 = vector.broadcast %cst_15 : f32 to vector<128x1xf32>
      %c0_16 = arith.constant 0 : index
      %c0_17 = arith.constant 0 : index
      %21 = vector.load %arg8[%c0_16, %c0_17] : memref<128x1xf32, #tpu.memory_space<vmem>>, vector<128x1xf32>
      tpu.vector_store %arg8[%c0_16, %c0_17], %20 {strides = array<i32>} : memref<128x1xf32, #tpu.memory_space<vmem>>, vector<128x1xf32>,
    } else {
    }
    %c0 = arith.constant 0 : index
    %c0_1 = arith.constant 0 : index
    %3 = vector.load %arg3[%c0, %c0_1] : memref<128x32xbf16, #tpu.memory_space<vmem>>, vector<128x32xbf16>
    %c0_2 = arith.constant 0 : index
    %c0_3 = arith.constant 0 : index
    %c0_4 = arith.constant 0 : index
    %4 = vector.load %arg2[%c0_2, %c0_3, %c0_4] : memref<1x32x128xbf16, #tpu.memory_space<vmem>>, vector<1x32x128xbf16>
    %5 = vector.shape_cast %4 : vector<1x32x128xbf16> to vector<32x128xbf16>
    %cst = arith.constant dense<0.000000e+00> : vector<128x128xf32>
    %6 = tpu.matmul %3, %5, %cst {dimension_numbers = #tpu.dot_dimension_numbers<[1], [0], [0], [1], [0, 0, 1, 1], [], []>} : vector<128x32xbf16>, vector<32x128xbf16>, vector<128x128xf32> -> vector<128x128xf32>
    %c0_5 = arith.constant 0 : index
    %c0_6 = arith.constant 0 : index
    %7 = vector.load %arg4[%c0_5, %c0_6] : memref<128x1xf32, #tpu.memory_space<vmem>>, vector<128x1xf32>
    %8 = vector.broadcast %7 : vector<128x1xf32> to vector<128x128xf32>
    %9 = arith.addf %6, %8 : vector<128x128xf32>
    %cst_7 = arith.constant 0.000000e+00 : f32
    %10 = vector.broadcast %cst_7 : f32 to vector<128x128xf32>
    %11 = arith.maximumf %9, %10 : vector<128x128xf32>
    %c0_8 = arith.constant 0 : index
    %c0_9 = arith.constant 0 : index
    %12 = vector.load %arg8[%c0_8, %c0_9] : memref<128x1xf32, #tpu.memory_space<vmem>>, vector<128x1xf32>
    %cst_10 = arith.constant dense<0.000000e+00> : vector<128xf32>
    %13 = vector.multi_reduction <add>, %11, %cst_10 [1] : vector<128x128xf32> to vector<128xf32>
    %14 = vector.shape_cast %13 : vector<128xf32> to vector<128x1xf32>
    %15 = arith.addf %12, %14 : vector<128x1xf32>
    %c0_11 = arith.constant 0 : index
    %c0_12 = arith.constant 0 : index
    %16 = vector.load %arg8[%c0_11, %c0_12] : memref<128x1xf32, #tpu.memory_space<vmem>>, vector<128x1xf32>
    tpu.vector_store %arg8[%c0_11, %c0_12], %15 {strides = array<i32>} : memref<128x1xf32, #tpu.memory_space<vmem>>, vector<128x1xf32>,
    %c0_i32_13 = arith.constant 0 : i32
    %17 = arith.cmpi eq, %arg1, %c0_i32_13 : i32
    %18 = arith.extui %17 : i1 to i32
    %c0_i32_14 = arith.constant 0 : i32
    %19 = arith.cmpi ne, %18, %c0_i32_14 : i32
    scf.if %19 {
      %c0_15 = arith.constant 0 : index
      %c0_16 = arith.constant 0 : index
      %20 = vector.load %arg8[%c0_15, %c0_16] : memref<128x1xf32, #tpu.memory_space<vmem>>, vector<128x1xf32>
      %c0_17 = arith.constant 0 : index
      %c0_18 = arith.constant 0 : index
      %21 = vector.load %arg4[%c0_17, %c0_18] : memref<128x1xf32, #tpu.memory_space<vmem>>, vector<128x1xf32>
      %cst_19 = arith.constant 0.000000e+00 : f32
      %22 = vector.broadcast %cst_19 : f32 to vector<128x1xf32>
      %23 = arith.maximumf %21, %22 : vector<128x1xf32>
      %cst_20 = arith.constant 7.900000e+01 : f32
      %24 = vector.broadcast %cst_20 : f32 to vector<128x1xf32>
      %25 = arith.mulf %24, %23 : vector<128x1xf32>
      %26 = arith.subf %20, %25 : vector<128x1xf32>
      %cst_21 = arith.constant 0.0204081628 : f32
      %27 = vector.broadcast %cst_21 : f32 to vector<128x1xf32>
      %28 = arith.mulf %26, %27 : vector<128x1xf32>
      %c0_22 = arith.constant 0 : index
      %c0_23 = arith.constant 0 : index
      %29 = vector.load %arg5[%c0_22, %c0_23] : memref<128x128xf32, #tpu.memory_space<vmem>>, vector<128x128xf32>
      %30 = vector.broadcast %28 : vector<128x1xf32> to vector<128x128xf32>
      %31 = arith.mulf %29, %30 : vector<128x128xf32>
      %cst_24 = arith.constant dense<0.000000e+00> : vector<128xf32>
      %32 = vector.multi_reduction <add>, %31, %cst_24 [0] : vector<128x128xf32> to vector<128xf32>
      %33 = vector.shape_cast %32 : vector<128xf32> to vector<1x128xf32>
      %c0_25 = arith.constant 0 : index
      %c0_26 = arith.constant 0 : index
      %34 = vector.load %arg6[%c0_25, %c0_26] : memref<1x128xf32, #tpu.memory_space<vmem>>, vector<1x128xf32>
      %35 = arith.addf %33, %34 : vector<1x128xf32>
      %c0_27 = arith.constant 0 : index
      %c0_28 = arith.constant 0 : index
      %c0_29 = arith.constant 0 : index
      %36 = vector.load %arg7[%c0_27, %c0_28, %c0_29] : memref<1x1x128xf32, #tpu.memory_space<vmem>>, vector<1x1x128xf32>
      %37 = vector.shape_cast %36 : vector<1x1x128xf32> to vector<1x128xf32>
      %38 = vector.shape_cast %35 : vector<1x128xf32> to vector<1x1x128xf32>
      tpu.vector_store %arg7[%c0_27, %c0_28, %c0_29], %38 {strides = array<i32>} : memref<1x1x128xf32, #tpu.memory_space<vmem>>, vector<1x1x128xf32>,
    } else {
    }
    return
  }
  func.func @transform_0(%arg0: i32, %arg1: i32) -> (i32, i32, i32) {
    %c0_i32 = arith.constant 0 : i32
    %c0_i32_0 = arith.constant 0 : i32
    return %arg0, %c0_i32, %arg1 : i32, i32, i32
  }
  func.func @transform_1(%arg0: i32, %arg1: i32) -> (i32, i32) {
    %c0_i32 = arith.constant 0 : i32
    %c0_i32_0 = arith.constant 0 : i32
    %c0_i32_1 = arith.constant 0 : i32
    return %c0_i32, %c0_i32_0 : i32, i32
  }
  func.func @transform_2(%arg0: i32, %arg1: i32) -> (i32, i32) {
    %c0_i32 = arith.constant 0 : i32
    %c0_i32_0 = arith.constant 0 : i32
    %c0_i32_1 = arith.constant 0 : i32
    return %c0_i32, %c0_i32_0 : i32, i32
  }
  func.func @transform_3(%arg0: i32, %arg1: i32) -> (i32, i32) {
    %c0_i32 = arith.constant 0 : i32
    %c0_i32_0 = arith.constant 0 : i32
    %c0_i32_1 = arith.constant 0 : i32
    return %c0_i32, %c0_i32_0 : i32, i32
  }
  func.func @transform_4(%arg0: i32, %arg1: i32) -> (i32, i32) {
    %c0_i32 = arith.constant 0 : i32
    %c0_i32_0 = arith.constant 0 : i32
    %c0_i32_1 = arith.constant 0 : i32
    return %c0_i32, %c0_i32_0 : i32, i32
  }
  func.func @transform_5(%arg0: i32, %arg1: i32) -> (i32, i32, i32) {
    %c0_i32 = arith.constant 0 : i32
    %c0_i32_0 = arith.constant 0 : i32
    %c0_i32_1 = arith.constant 0 : i32
    return %arg0, %c0_i32, %c0_i32_0 : i32, i32, i32
  }
}

</mosaic_0001>

<bundles_post_ra>
// kernel: pnasnet5larget_forward.1
= control target key start
LH: loop header
LB: loop body
LE: loop exit
PB: predicated region body
PF: predicated region fallthrough
CT: control target
= control target key end

     0   :  { %10 = vsyncpa [#allocation4], 0  ;;  %s1555_s0 = inlined_call_operand.vmem [shape: bf16[2,32,128], index: 0, kind: input, shape index: {}]   ;;  %s1556_s1 = inlined_call_operand.vmem [shape: bf16[128,32], index: 1, kind: input, shape index: {}]   ;;  %s1557_s2 = inlined_call_operand.vmem [shape: f32[128,1], index: 2, kind: input, shape index: {}]   ;;  %s1558_s3 = inlined_call_operand.vmem [shape: f32[128,128], index: 3, kind: input, shape index: {}]   ;;  %s1559_s4 = inlined_call_operand.vmem [shape: f32[1,128], index: 4, kind: input, shape index: {}]   ;;  %s1560_s5 = inlined_call_operand.hbm [shape: f32[2,1,128], index: 5, kind: output, shape index: {}]  }
   0x1   :  { %12 = vsyncpa [#allocation4 + $0x1], 0  ;;  %s1216_s18 = smov 0   ;;  %s1218_s19 = smov 0  }
   0x2   :  { %s1220_s20 = smov 0   ;;  %s1222_s21 = smov 0  }
   0x3   :  { %s1224_s22 = smov 0   ;;  %s1226_s23 = smov 0  }
   0x4 LB: > { %s971_s24 = sadd.s32 4294967295, %s1181_s23   ;;  %s972_s25 = sadd.s32 4294967294, %s1181_s23   ;;  %s1181_s23 = sphi %s1226_s23, %s18_s23   ;;  %s1177_s22 = sphi %s1224_s22, %s1567_s22   ;;  %s1173_s21 = sphi %s1222_s21, %s1566_s21   ;;  %s1169_s20 = sphi %s1220_s20, %s1565_s20   ;;  %s1165_s19 = sphi %s1218_s19, %s1564_s19   ;;  %s1161_s18 = sphi %s1216_s18, %s1563_s18  }
   0x5   : > { %s30_s26 = sadd.s32 1, %s1177_s22  ;;  %s149_s27 = sadd.s32 1, %s1169_s20 }
   0x6   : > { %p32_p0 = scmp.ge.s32.totalorder %s30_s26, 2  ;;  %p159_p1 = scmp.ne.s32.totalorder %s1169_s20, %s1165_s19 }
   0x7   : > { %p160_p2 = scmp.eq.s32.totalorder %s971_s24, 1  ;;  %p165_p3 = scmp.ne.s32.totalorder %s1165_s19, %s1161_s18 }
   0x8   : > { %s1569_s26 = smov (%p32_p0, %s30_s26), 0  ;;  %p166_p5 = scmp.eq.s32.totalorder %s972_s25, 1 }
   0x9   : > { %p1256_p4 = por %p160_p2, %p159_p1  ;;  %s146_s29 = ssub.s32 %s1177_s22, %s1569_s26 }
   0xa   : > { %p975_p6 = scmp.ge.s32.totalorder %s1181_s23, 1  ;;  %p147_p7 = scmp.eq.s32.totalorder %s146_s29, 0 }
   0xb   : > { %p1263_p8 = por %p166_p5, %p165_p3  ;;  %p207_p9 = scmp.lt.s32.totalorder %s1181_s23, 3 }
   0xc   : > { %s1269_s6 = scalar_select %p147_p7, %s1169_s20, %s149_s27  }
   0xd   : > { %p208_p10 = pnand %p975_p6, %p207_p9 }
   0xe   : > { %p237_p11 = scmp.lt.s32.totalorder (!%p208_p10), %s1173_s21, 1  ;;  %v1095_v0 = vld [vmem:[%s1556_s1] sm:$0xff] (!%p208_p10)   ;;  %vm435_vm0 = vcmask (!%p208_p10), 261120   ;;  %v1183_v2 = vmov (!%p208_p10), 0   ;;  %v1292_v6 = vld [vmem:[%s1557_s2 + $0x10] sm:$0xff] (!%p208_p10)  ;;  %v1097_v7 = vld [vmem:[%s1556_s1 + $0x8] sm:$0xff] (!%p208_p10)  }
   0xf   : > { %211 = sbr.rel (%p208_p10) target bundleno = 600 (0x258), region = 40  ;;  %v1096_v1 = vld [vmem:[%s1556_s1 + $0x20] sm:$0xff] (!%p208_p10)   ;;  %1014 = vmatprep.mubr.msk.bf16.mxu0 (!%p208_p10), %vm435_vm0, %v1095_v0  ;;  %1091 = vset.pattern.permute.xlu0 (!%p208_p10), %v1183_v2  ;;  %v1098_v8 = vld [vmem:[%s1556_s1 + $0x28] sm:$0xff] (!%p208_p10)   ;;  %v1310_v10 = vld [vmem:[%s1557_s2 + $0x18] sm:$0xff] (!%p208_p10)  ;;  %vm250_vm1 = vcmask (!%p208_p10), 7168   ;;  %v1184_v27 = vmov (!%p208_p10), 0.0  }
  0x10   : > { %1022 = vmatprep.mubr.msk.bf16.mxu1 (!%p208_p10), %vm435_vm0, %v1096_v1  ;;  %1092 = vset.pattern.permute.xlu1 (!%p208_p10), %v1183_v2  ;;  %v1287_v5 = vld [vmem:[%s1557_s2] sm:$0xff] (!%p208_p10)  ;;  %v1305_v9 = vld [vmem:[%s1557_s2 + $0x8] sm:$0xff] (!%p208_p10)  ;;  %v1099_v11 = vld [vmem:[%s1556_s1 + $0x10] sm:$0xff] (!%p208_p10)   ;;  %251 = vst.msk [vmem:[#allocation2] sm:$0xff] (!%p208_p10), %vm250_vm1, %v1184_v27  ;;  %s235_s17 = sand.u32 (!%p208_p10), 1, %s1165_s19   ;;  %s996_s27 = sshll.u32 (!%p208_p10), %s1173_s21, 4 }
  0x11   : > { %305 = vperm.xlu0 (!%p208_p10), %1091, %v1287_v5   ;;  %315 = vperm.xlu1 (!%p208_p10), %1092, %v1292_v6   ;;  %v1100_v12 = vld [vmem:[%s1556_s1 + $0x30] sm:$0xff] (!%p208_p10)   ;;  %v1325_v13 = vld [vmem:[%s1557_s2 + $0x20] sm:$0xff] (!%p208_p10)  ;;  %v1330_v14 = vld [vmem:[%s1557_s2 + $0x28] sm:$0xff] (!%p208_p10)  ;;  %252 = vst.msk [vmem:[#allocation2 + $0x8] sm:$0xff] (!%p208_p10), %vm250_vm1, %v1184_v27  ;;  %s236_s29 = scalar_lea.vmem (!%p208_p10), [#allocation3], %s235_s17  ;;  %s1508_s10 = scalar_lea.hbm (!%p208_p10), %s1560_s5, %s996_s27 }
  0x12   : > { %v1101_v15 = vld [vmem:[%s1556_s1 + $0x18] sm:$0xff] (!%p208_p10)   ;;  %v1345_v17 = vld [vmem:[%s1557_s2 + $0x30] sm:$0xff] (!%p208_p10)  ;;  %v1359_v19 = vld [vmem:[%s1557_s2 + $0x40] sm:$0xff] (!%p208_p10)  ;;  %253 = vst.msk [vmem:[#allocation2 + $0x10] sm:$0xff] (!%p208_p10), %vm250_vm1, %v1184_v27  ;;  %s902_s7 = sshll.u32 (!%p208_p10), %s236_s29, 4  ;;  %s1510_s7 = int_to_ptr.vmem [resolvable:$true] %s902_s7 }
  0x13   : > { %v1102_v16 = vld [vmem:[%s1556_s1 + $0x38] sm:$0xff] (!%p208_p10)   ;;  %v1364_v20 = vld [vmem:[%s1557_s2 + $0x48] sm:$0xff] (!%p208_p10)  ;;  %v1371_v21 = vld [vmem:[%s1557_s2 + $0x50] sm:$0xff] (!%p208_p10)  ;;  %254 = vst.msk [vmem:[#allocation2 + $0x18] sm:$0xff] (!%p208_p10), %vm250_vm1, %v1184_v27 }
  0x14   : > { %v1350_v18 = vld [vmem:[%s1557_s2 + $0x38] sm:$0xff] (!%p208_p10)  ;;  %v1383_v23 = vld [vmem:[%s1557_s2 + $0x60] sm:$0xff] (!%p208_p10)  ;;  %v1388_v24 = vld [vmem:[%s1557_s2 + $0x68] sm:$0xff] (!%p208_p10)  ;;  %255 = vst.msk [vmem:[#allocation2 + $0x20] sm:$0xff] (!%p208_p10), %vm250_vm1, %v1184_v27 }
  0x15   : > { %310 = vperm.xlu0 (!%p208_p10), %1091, %v1305_v9   ;;  %320 = vperm.xlu1 (!%p208_p10), %1092, %v1310_v10   ;;  %v1376_v22 = vld [vmem:[%s1557_s2 + $0x58] sm:$0xff] (!%p208_p10)  ;;  %v1395_v25 = vld [vmem:[%s1557_s2 + $0x70] sm:$0xff] (!%p208_p10)  ;;  %256 = vst.msk [vmem:[#allocation2 + $0x28] sm:$0xff] (!%p208_p10), %vm250_vm1, %v1184_v27  ;;  %257 = vst.msk [vmem:[#allocation2 + $0x30] sm:$0xff] (!%p208_p10), %vm250_vm1, %v1184_v27 }
  0x16   : > { %s238_s11 = scalar_select %p237_p11, %s1173_s21, 1  ;;  %v1400_v26 = vld [vmem:[%s1557_s2 + $0x78] sm:$0xff]  ;;  %258 = vst.msk [vmem:[#allocation2 + $0x38] sm:$0xff] %vm250_vm1, %v1184_v27  ;;  %259 = vst.msk [vmem:[#allocation2 + $0x40] sm:$0xff] %vm250_vm1, %v1184_v27 }
  0x17   : > { %260 = vst.msk [vmem:[#allocation2 + $0x48] sm:$0xff] %vm250_vm1, %v1184_v27  ;;  %261 = vst.msk [vmem:[#allocation2 + $0x50] sm:$0xff] %vm250_vm1, %v1184_v27  ;;  %s1185_s21 = smov [#allocation3]  }
  0x18   : > { %s999_s12 = sshll.u32 %s238_s11, 4  ;;  %262 = vst.msk [vmem:[#allocation2 + $0x58] sm:$0xff] %vm250_vm1, %v1184_v27  ;;  %263 = vst.msk [vmem:[#allocation2 + $0x60] sm:$0xff] %vm250_vm1, %v1184_v27  ;;  %s890_s11 = scalar_lea.sflag [#allocation4], %s235_s17 }
  0x19   : > { %s244_s15 = scalar_lea.vmem %s1555_s0, %s999_s12  ;;  %325 = vperm.xlu0 %1091, %v1325_v13   ;;  %330 = vperm.xlu1 %1092, %v1330_v14   ;;  %264 = vst.msk [vmem:[#allocation2 + $0x68] sm:$0xff] %vm250_vm1, %v1184_v27  ;;  %265 = vst.msk [vmem:[#allocation2 + $0x70] sm:$0xff] %vm250_vm1, %v1184_v27  ;;  %s1103_s12 = scalar_lea.vmem %s1510_s7, 16 }
  0x1a   : > { %v1093_v3 = vld [vmem:[%s244_s15] sm:$0xff]   ;;  %v1094_v4 = vld [vmem:[%s244_s15 + $0x8] sm:$0xff]   ;;  %266 = vst.msk [vmem:[#allocation2 + $0x78] sm:$0xff] %vm250_vm1, %v1184_v27  ;;  %p1104_p12 = scmp.ne.s32.totalorder %s1510_s7, %s1103_s12  ;;  %s1107_s13 = sshll.u32 %s1185_s21, 4  ;;  %s1108_s13 = int_to_ptr.vmem [resolvable:$false] %s1107_s13 }
  0x1b   : > { %1010 = vmatprep.subr.bf16.mxu0 %v1093_v3  ;;  %1030 = vmatprep.subr.bf16.mxu1 %v1093_v3  ;;  %s1109_s14 = scalar_lea.vmem %s1108_s13, 32  ;;  %p1110_p1 = scmp.lt.s32.totalorder %s1510_s7, %s1108_s13 }
  0x1c   : > { %1011 = vmatpush3.bf16.msra.mxu0 %v1093_v3  ;;  %1032 = vmatpush3.bf16.msra.mxu1 %v1093_v3  ;;  %p1105_p13 = pnand %p1104_p12, %p1256_p4  ;;  %p1111_p2 = scmp.lt.s32.totalorder %s1109_s14, %s1103_s12 }
  0x1d   : > { %1012 = vmatprep.subr.bf16.mxu0 %v1094_v4  ;;  %1031 = vmatprep.subr.bf16.mxu1 %v1094_v4 }
  0x1e   : > { %335 = vperm.xlu0 %1091, %v1345_v17   ;;  %340 = vperm.xlu1 %1092, %v1350_v18   ;;  %p1106_p0 = pneg %p1105_p13  ;;  %p1112_p3 = por %p1111_p2, %p1110_p1 }
  0x20   : > { %1013 = vmatpush3.bf16.msra.mxu0 %v1094_v4  ;;  %1033 = vmatpush3.bf16.msra.mxu1 %v1094_v4  ;;  %p1113_p5 = pnand %p1112_p3, %p1106_p0 }
  0x22   : > { %345 = vperm.xlu0 %1091, %v1359_v19   ;;  %350 = vperm.xlu1 %1092, %v1364_v20  }
  0x23   : > { %1015 = vmatmul.mubr.msk.bf16.vlgmr.msra.gmra.mrb[0].mxu0 %vm435_vm0, %v1097_v7  ;;  %1023 = vmatmul.mubr.msk.bf16.vlgmr.msra.gmra.mrb[0].mxu1 %vm435_vm0, %v1098_v8 }
  0x24   : > { %1018 = vmatprep.mubr.msk.bf16.mxu0 %vm435_vm0, %v1099_v11  ;;  %1026 = vmatprep.mubr.msk.bf16.mxu1 %vm435_vm0, %v1100_v12 }
  0x26   : > { %355 = vperm.xlu0 %1091, %v1371_v21   ;;  %360 = vperm.xlu1 %1092, %v1376_v22  }
  0x2a   : > { %365 = vperm.xlu0 %1091, %v1383_v23   ;;  %370 = vperm.xlu1 %1092, %v1388_v24  }
  0x2b   : > { %1019 = vmatmul.mubr.msk.bf16.gmra.mrb[4].mxu0 %vm435_vm0, %v1101_v15  ;;  %1027 = vmatmul.mubr.msk.bf16.gmra.mrb[4].mxu1 %vm435_vm0, %v1102_v16 }
  0x2e   : > { %375 = vperm.xlu0 %1091, %v1395_v25   ;;  %380 = vperm.xlu1 %1092, %v1400_v26  }
  0x90   : > { %v306_v28 = vpop.permute.xlu0 %305  ;;  %v316_v29 = vpop.permute.xlu1 %315 }
  0x94   : > { %v311_v30 = vpop.permute.xlu0 %310  ;;  %v321_v31 = vpop.permute.xlu1 %320 }
  0x98   : > { %v326_v32 = vpop.permute.xlu0 %325  ;;  %v331_v33 = vpop.permute.xlu1 %330 }
  0x9d   : > { %v336_v34 = vpop.permute.xlu0 %335  ;;  %v341_v48 = vpop.permute.xlu1 %340 }
  0xa1   : > { %v346_v49 = vpop.permute.xlu0 %345  ;;  %v351_v1 = vpop.permute.xlu1 %350 }
  0xa5   : > { %v356_v2 = vpop.permute.xlu0 %355  ;;  %v361_v11 = vpop.permute.xlu1 %360 }
  0xf6   : > { %v1016_v35 = vpop.f32.mrb[0].mxu0  ;;  %v1024_v36 = vpop.f32.mrb[0].mxu1 }
  0xf7   : > { %v494_v37 = vpop.f32.mrb[1].mxu0  ;;  %v526_v38 = vpop.f32.mrb[1].mxu1  ;;  %v503_v44 = vadd.f32 %v1016_v35, %v316_v29  ;;  %v535_v12 = vadd.f32 %v1024_v36, %v356_v2  ;;  %v693_v2 = vmax.f32 %v1325_v13, 0.0  ;;  %v695_v13 = vmax.f32 %v1345_v17, 0.0 }
  0xf8   : > { %v495_v39 = vadd.f32 %v494_v37, %v306_v28  ;;  %v1017_v40 = vpop.f32.mrb[2].mxu0  ;;  %v1025_v41 = vpop.f32.mrb[2].mxu1  ;;  %v527_v3 = vadd.f32 %v526_v38, %v346_v49  ;;  %v575_v49 = vld [vmem:[#allocation2 + $0x10] sm:$0xff] }
  0xf9   : > { %v497_v42 = vpop.f32.mrb[3].mxu0  ;;  %v529_v43 = vpop.f32.mrb[3].mxu1  ;;  %v559_v50 = vmax.f32 %v503_v44, 0.0  ;;  %v506_v51 = vadd.f32 %v1017_v40, %v321_v31  ;;  %v567_v29 = vmax.f32 %v535_v12, 0.0 }
  0xfa   : > { %v557_v45 = vmax.f32 %v495_v39, 0.0  ;;  %v498_v46 = vadd.f32 %v497_v42, %v311_v30  ;;  %v565_v15 = vmax.f32 %v527_v3, 0.0  ;;  %v530_v16 = vadd.f32 %v529_v43, %v351_v1  ;;  %v366_v28 = vpop.permute.xlu0 %365 }
  0xfb   : > { %v560_v61 = vmax.f32 %v506_v51, 0.0  ;;  %v538_v30 = vadd.f32 %v1025_v41, %v361_v11  ;;  %v573_v41 = vld [vmem:[#allocation2] sm:$0xff]  ;;  %v689_v51 = vmax.f32 %v1287_v5, 0.0  ;;  %v578_v5 = vld [vmem:[#allocation2 + $0x28] sm:$0xff] }
  0xfc   : > { %v558_v47 = vmax.f32 %v498_v46, 0.0  ;;  %589 = vadd.xlane.f32.xlu0 %v557_v45  ;;  %v566_v31 = vmax.f32 %v530_v16, 0.0  ;;  %v574_v46 = vld [vmem:[#allocation2 + $0x8] sm:$0xff] }
  0xfd   : > { %v568_v35 = vmax.f32 %v538_v30, 0.0  ;;  %v709_v30 = vmul.f32 79.0, %v693_v2  ;;  %v587_v2 = vld [vmem:[#allocation2 + $0x70] sm:$0xff] }
  0xfe   : > { %v1020_v52 = vpop.f32.mrb[4].mxu0  ;;  %v1028_v53 = vpop.f32.mrb[4].mxu1  ;;  %591 = vadd.xlane.f32.xlu1 %v558_v47 }
  0xff   : > { %v510_v54 = vpop.f32.mrb[5].mxu0  ;;  %v542_v55 = vpop.f32.mrb[5].mxu1  ;;  %v519_v62 = vadd.f32 %v1020_v52, %v336_v34 }
 0x100   : > { %v511_v56 = vadd.f32 %v510_v54, %v326_v32  ;;  %v1021_v57 = vpop.f32.mrb[6].mxu0  ;;  %v1029_v58 = vpop.f32.mrb[6].mxu1  ;;  %593 = vadd.xlane.f32.xlu0 %v559_v50  ;;  %v543_v32 = vadd.f32 %v542_v55, %v366_v28  ;;  %v690_v54 = vmax.f32 %v1305_v9, 0.0  ;;  %v577_v55 = vld [vmem:[#allocation2 + $0x20] sm:$0xff]  ;;  %v580_v28 = vld [vmem:[#allocation2 + $0x38] sm:$0xff] }
 0x101   : > { %v513_v59 = vpop.f32.mrb[7].mxu0  ;;  %v545_v60 = vpop.f32.mrb[7].mxu1  ;;  %v563_v4 = vmax.f32 %v519_v62, 0.0  ;;  %v522_v7 = vadd.f32 %v1021_v57, %v341_v48  ;;  %v705_v57 = vmul.f32 79.0, %v689_v51 }
 0x102   : > { %v561_v63 = vmax.f32 %v511_v56, 0.0  ;;  %v514_v0 = vadd.f32 %v513_v59, %v331_v33  ;;  %v371_v33 = vpop.permute.xlu1 %370  ;;  %v376_v34 = vpop.permute.xlu0 %375  ;;  %v569_v38 = vmax.f32 %v543_v32, 0.0  ;;  %v576_v56 = vld [vmem:[#allocation2 + $0x18] sm:$0xff] }
 0x103   : > { %v564_v27 = vmax.f32 %v522_v7, 0.0  ;;  %v551_v37 = vadd.f32 %v1028_v53, %v376_v34  ;;  %v546_v39 = vadd.f32 %v545_v60, %v371_v33  ;;  %v694_v33 = vmax.f32 %v1330_v14, 0.0 }
 0x104   : > { %597 = vadd.xlane.f32.xlu1 %v561_v63  ;;  %595 = vadd.xlane.f32.xlu0 %v560_v61  ;;  %v562_v8 = vmax.f32 %v514_v0, 0.0  ;;  %v706_v63 = vmul.f32 79.0, %v690_v54  ;;  %v579_v0 = vld [vmem:[#allocation2 + $0x30] sm:$0xff]  ;;  %v584_v54 = vld [vmem:[#allocation2 + $0x58] sm:$0xff] }
 0x105   : > { %v571_v40 = vmax.f32 %v551_v37, 0.0  ;;  %v570_v43 = vmax.f32 %v546_v39, 0.0 }
 0x106   : > { %v381_v36 = vpop.permute.xlu1 %380 }
 0x107   : > { %v554_v42 = vadd.f32 %v1029_v58, %v381_v36  ;;  %v691_v58 = vmax.f32 %v1292_v6, 0.0  ;;  %v583_v36 = vld [vmem:[#allocation2 + $0x50] sm:$0xff] }
 0x108   : > { %601 = vadd.xlane.f32.xlu1 %v563_v4  ;;  %599 = vadd.xlane.f32.xlu0 %v562_v8  ;;  %v692_v4 = vmax.f32 %v1310_v10, 0.0 }
 0x109   : > { %v572_v44 = vmax.f32 %v554_v42, 0.0  ;;  %v707_v3 = vmul.f32 79.0, %v691_v58 }
 0x10a   : > { %v708_v32 = vmul.f32 79.0, %v692_v4 }
 0x10c   : > { %605 = vadd.xlane.f32.xlu1 %v565_v15  ;;  %603 = vadd.xlane.f32.xlu0 %v564_v27  ;;  %v581_v27 = vld [vmem:[#allocation2 + $0x40] sm:$0xff] }
 0x110   : > { %609 = vadd.xlane.f32.xlu1 %v567_v29  ;;  %607 = vadd.xlane.f32.xlu0 %v566_v31 }
 0x114   : > { %613 = vadd.xlane.f32.xlu1 %v569_v38  ;;  %611 = vadd.xlane.f32.xlu0 %v568_v35 }
 0x118   : > { %617 = vadd.xlane.f32.xlu1 %v571_v40  ;;  %615 = vadd.xlane.f32.xlu0 %v570_v43  ;;  %v582_v40 = vld [vmem:[#allocation2 + $0x48] sm:$0xff]  ;;  %v711_v43 = vmul.f32 79.0, %v695_v13 }
 0x11c   : > { %619 = vadd.xlane.f32.xlu0 %v572_v44  ;;  %v697_v44 = vmax.f32 %v1359_v19, 0.0 }
 0x189   : > { %v590_v45 = vpop.xlane.xlu0 %589 }
 0x18a   : > { %v621_v47 = vadd.f32 %v590_v45, %v573_v41  ;;  %v710_v45 = vmul.f32 79.0, %v694_v33 }
 0x18b   : > { %v592_v48 = vpop.xlane.xlu1 %591 }
 0x18c   : > { %638 = vst.msk [vmem:[#allocation2] sm:$0xff] %vm250_vm1, %v621_v47  ;;  %v622_v50 = vadd.f32 %v592_v48, %v574_v46  ;;  %v696_v46 = vmax.f32 %v1350_v18, 0.0 }
 0x18d   : > { %v594_v52 = vpop.xlane.xlu0 %593 }
 0x18e   : > { %639 = vst.msk [vmem:[#allocation2 + $0x8] sm:$0xff] %vm250_vm1, %v622_v50  ;;  %v623_v53 = vadd.f32 %v594_v52, %v575_v49 }
 0x190   : > { %640 = vst.msk [vmem:[#allocation2 + $0x10] sm:$0xff] %vm250_vm1, %v623_v53  ;;  %v585_v53 = vld [vmem:[#allocation2 + $0x60] sm:$0xff] }
 0x191   : > { %v598_v59 = vpop.xlane.xlu1 %597  ;;  %v596_v60 = vpop.xlane.xlu0 %595 }
 0x192   : > { %v625_v61 = vadd.f32 %v598_v59, %v577_v55  ;;  %v624_v62 = vadd.f32 %v596_v60, %v576_v56  ;;  %v713_v56 = vmul.f32 79.0, %v697_v44  ;;  %v712_v59 = vmul.f32 79.0, %v696_v46 }
 0x193   : > { %v657_v1 = vld [vmem:[#allocation2] sm:$0xff]  ;;  %v698_v60 = vmax.f32 %v1364_v20, 0.0  ;;  %v704_v44 = vmax.f32 %v1400_v26, 0.0 }
 0x194   : > { %642 = vst.msk [vmem:[#allocation2 + $0x20] sm:$0xff] %vm250_vm1, %v625_v61  ;;  %641 = vst.msk [vmem:[#allocation2 + $0x18] sm:$0xff] %vm250_vm1, %v624_v62  ;;  %v721_v9 = vsub.f32 %v657_v1, %v705_v57  ;;  %v699_v57 = vmax.f32 %v1371_v21, 0.0  ;;  %v753_v26 = vld [vmem:[%s1558_s3] sm:$0xff] }
 0x195   : > { %v602_v7 = vpop.xlane.xlu1 %601  ;;  %v600_v6 = vpop.xlane.xlu0 %599  ;;  %v658_v8 = vld [vmem:[#allocation2 + $0x8] sm:$0xff] }
 0x196   : > { %v627_v11 = vadd.f32 %v602_v7, %v579_v0  ;;  %v626_v12 = vadd.f32 %v600_v6, %v578_v5  ;;  %v737_v15 = vmul.f32 0.020408163, %v721_v9  ;;  %v722_v16 = vsub.f32 %v658_v8, %v706_v63  ;;  %v586_v9 = vld [vmem:[#allocation2 + $0x68] sm:$0xff] }
 0x197   : > { %v659_v29 = vld [vmem:[#allocation2 + $0x10] sm:$0xff]  ;;  %v715_v4 = vmul.f32 79.0, %v699_v57  ;;  %v701_v7 = vmax.f32 %v1383_v23, 0.0  ;;  %v714_v8 = vmul.f32 79.0, %v698_v60 }
 0x198   : > { %644 = vst.msk [vmem:[#allocation2 + $0x30] sm:$0xff] %vm250_vm1, %v627_v11  ;;  %643 = vst.msk [vmem:[#allocation2 + $0x28] sm:$0xff] %vm250_vm1, %v626_v12  ;;  %771 = vperm.xlu1 %1092, %v737_v15   ;;  %v738_v31 = vmul.f32 0.020408163, %v722_v16  ;;  %v723_v10 = vsub.f32 %v659_v29, %v707_v3  ;;  %v700_v11 = vmax.f32 %v1376_v22, 0.0 }
 0x199   : > { %v606_v34 = vpop.xlane.xlu1 %605  ;;  %v604_v35 = vpop.xlane.xlu0 %603 }
 0x19a   : > { %v629_v37 = vadd.f32 %v606_v34, %v581_v27  ;;  %v628_v38 = vadd.f32 %v604_v35, %v580_v28  ;;  %776 = vperm.xlu0 %1091, %v738_v31   ;;  %v739_v39 = vmul.f32 0.020408163, %v723_v10  ;;  %v717_v31 = vmul.f32 79.0, %v701_v7 }
 0x19b   : > { %v661_v42 = vld [vmem:[#allocation2 + $0x20] sm:$0xff]  ;;  %v660_v17 = vld [vmem:[#allocation2 + $0x18] sm:$0xff]  ;;  %v703_v10 = vmax.f32 %v1395_v25, 0.0  ;;  %v716_v33 = vmul.f32 79.0, %v700_v11  ;;  %v702_v34 = vmax.f32 %v1388_v24, 0.0 }
 0x19c   : > { %646 = vst.msk [vmem:[#allocation2 + $0x40] sm:$0xff] %vm250_vm1, %v629_v37  ;;  %645 = vst.msk [vmem:[#allocation2 + $0x38] sm:$0xff] %vm250_vm1, %v628_v38  ;;  %781 = vperm.xlu1 %1092, %v739_v39   ;;  %v725_v41 = vsub.f32 %v661_v42, %v709_v30  ;;  %v724_v14 = vsub.f32 %v660_v17, %v708_v32  ;;  %v588_v30 = vld [vmem:[#allocation2 + $0x78] sm:$0xff] }
 0x19d   : > { %v610_v47 = vpop.xlane.xlu1 %609  ;;  %v608_v48 = vpop.xlane.xlu0 %607  ;;  %v719_v42 = vmul.f32 79.0, %v703_v10  ;;  %v763_v10 = vld [vmem:[%s1558_s3 + $0x50] sm:$0xff] }
 0x19e   : > { %v631_v49 = vadd.f32 %v610_v47, %v583_v36  ;;  %v630_v50 = vadd.f32 %v608_v48, %v582_v40  ;;  %v741_v51 = vmul.f32 0.020408163, %v725_v41  ;;  %v740_v52 = vmul.f32 0.020408163, %v724_v14 }
 0x19f   : > { %v663_v55 = vld [vmem:[#allocation2 + $0x30] sm:$0xff]  ;;  %v662_v19 = vld [vmem:[#allocation2 + $0x28] sm:$0xff]  ;;  %v720_v48 = vmul.f32 79.0, %v704_v44 }
 0x1a0   : > { %648 = vst.msk [vmem:[#allocation2 + $0x50] sm:$0xff] %vm250_vm1, %v631_v49  ;;  %647 = vst.msk [vmem:[#allocation2 + $0x48] sm:$0xff] %vm250_vm1, %v630_v50  ;;  %791 = vperm.xlu0 %1091, %v741_v51   ;;  %786 = vperm.xlu1 %1092, %v740_v52   ;;  %v727_v18 = vsub.f32 %v663_v55, %v711_v43  ;;  %v726_v58 = vsub.f32 %v662_v19, %v710_v45  ;;  %v718_v43 = vmul.f32 79.0, %v702_v34  ;;  %v754_v55 = vld [vmem:[%s1558_s3 + $0x8] sm:$0xff]  ;;  %v764_v34 = vld [vmem:[%s1558_s3 + $0x58] sm:$0xff] }
 0x1a1   : > { %v614_v61 = vpop.xlane.xlu1 %613  ;;  %v612_v62 = vpop.xlane.xlu0 %611 }
 0x1a2   : > { %v633_v63 = vadd.f32 %v614_v61, %v585_v53  ;;  %v632_v0 = vadd.f32 %v612_v62, %v584_v54  ;;  %v743_v5 = vmul.f32 0.020408163, %v727_v18  ;;  %v742_v1 = vmul.f32 0.020408163, %v726_v58  ;;  %v756_v61 = vld [vmem:[%s1558_s3 + $0x18] sm:$0xff] }
 0x1a3   : > { %v665_v21 = vld [vmem:[#allocation2 + $0x40] sm:$0xff]  ;;  %v664_v3 = vld [vmem:[#allocation2 + $0x38] sm:$0xff] }
 0x1a4   : > { %650 = vst.msk [vmem:[#allocation2 + $0x60] sm:$0xff] %vm250_vm1, %v633_v63  ;;  %649 = vst.msk [vmem:[#allocation2 + $0x58] sm:$0xff] %vm250_vm1, %v632_v0  ;;  %801 = vperm.xlu0 %1091, %v743_v5   ;;  %796 = vperm.xlu1 %1092, %v742_v1   ;;  %v729_v20 = vsub.f32 %v665_v21, %v713_v56  ;;  %v728_v6 = vsub.f32 %v664_v3, %v712_v59  ;;  %v755_v56 = vld [vmem:[%s1558_s3 + $0x10] sm:$0xff]  ;;  %v757_v63 = vld [vmem:[%s1558_s3 + $0x20] sm:$0xff] }
 0x1a5   : > { %v618_v12 = vpop.xlane.xlu1 %617  ;;  %v616_v15 = vpop.xlane.xlu0 %615 }
 0x1a6   : > { %v635_v16 = vadd.f32 %v618_v12, %v587_v2  ;;  %v634_v27 = vadd.f32 %v616_v15, %v586_v9  ;;  %v745_v28 = vmul.f32 0.020408163, %v729_v20  ;;  %v744_v29 = vmul.f32 0.020408163, %v728_v6  ;;  %v758_v2 = vld [vmem:[%s1558_s3 + $0x28] sm:$0xff] }
 0x1a7   : > { %v667_v13 = vld [vmem:[#allocation2 + $0x50] sm:$0xff]  ;;  %v666_v23 = vld [vmem:[#allocation2 + $0x48] sm:$0xff] }
 0x1a8   : > { %652 = vst.msk [vmem:[#allocation2 + $0x70] sm:$0xff] %vm250_vm1, %v635_v16  ;;  %651 = vst.msk [vmem:[#allocation2 + $0x68] sm:$0xff] %vm250_vm1, %v634_v27  ;;  %811 = vperm.xlu0 %1091, %v745_v28   ;;  %806 = vperm.xlu1 %1092, %v744_v29   ;;  %v731_v32 = vsub.f32 %v667_v13, %v715_v4  ;;  %v730_v22 = vsub.f32 %v666_v23, %v714_v8  ;;  %v759_v4 = vld [vmem:[%s1558_s3 + $0x30] sm:$0xff]  ;;  %v760_v8 = vld [vmem:[%s1558_s3 + $0x38] sm:$0xff] }
 0x1a9   : > { %v620_v35 = vpop.xlane.xlu0 %619  ;;  %v761_v16 = vld [vmem:[%s1558_s3 + $0x40] sm:$0xff] }
 0x1aa   : > { %v636_v37 = vadd.f32 %v620_v35, %v588_v30  ;;  %v747_v38 = vmul.f32 0.020408163, %v731_v32  ;;  %v746_v39 = vmul.f32 0.020408163, %v730_v22  ;;  %v762_v30 = vld [vmem:[%s1558_s3 + $0x48] sm:$0xff] }
 0x1ab   : > { %v669_v36 = vld [vmem:[#allocation2 + $0x60] sm:$0xff]  ;;  %v668_v40 = vld [vmem:[#allocation2 + $0x58] sm:$0xff] }
 0x1ac   : > { %653 = vst.msk [vmem:[#allocation2 + $0x78] sm:$0xff] %vm250_vm1, %v636_v37  ;;  %821 = vperm.xlu0 %1091, %v747_v38   ;;  %816 = vperm.xlu1 %1092, %v746_v39   ;;  %v733_v25 = vsub.f32 %v669_v36, %v717_v31  ;;  %v732_v17 = vsub.f32 %v668_v40, %v716_v33  ;;  %v765_v39 = vld [vmem:[%s1558_s3 + $0x60] sm:$0xff] }
 0x1ae   : > { %v749_v41 = vmul.f32 0.020408163, %v733_v25  ;;  %v748_v14 = vmul.f32 0.020408163, %v732_v17  ;;  %v766_v25 = vld [vmem:[%s1558_s3 + $0x68] sm:$0xff] }
 0x1af   : > { %v671_v45 = vld [vmem:[#allocation2 + $0x70] sm:$0xff]  ;;  %v670_v24 = vld [vmem:[#allocation2 + $0x68] sm:$0xff] }
 0x1b0   : > { %831 = vperm.xlu0 %1091, %v749_v41   ;;  %826 = vperm.xlu1 %1092, %v748_v14   ;;  %v735_v46 = vsub.f32 %v671_v45, %v719_v42  ;;  %v734_v47 = vsub.f32 %v670_v24, %v718_v43  ;;  %v767_v41 = vld [vmem:[%s1558_s3 + $0x70] sm:$0xff] }
 0x1b2   : > { %v751_v49 = vmul.f32 0.020408163, %v735_v46  ;;  %v750_v50 = vmul.f32 0.020408163, %v734_v47  ;;  %v768_v46 = vld [vmem:[%s1558_s3 + $0x78] sm:$0xff] }
 0x1b3   : > { %v672_v51 = vld [vmem:[#allocation2 + $0x78] sm:$0xff] }
 0x1b4   : > { %841 = vperm.xlu0 %1091, %v751_v49   ;;  %836 = vperm.xlu1 %1092, %v750_v50   ;;  %v736_v52 = vsub.f32 %v672_v51, %v720_v48 }
 0x1b6   : > { %v752_v53 = vmul.f32 0.020408163, %v736_v52 }
 0x1b8   : > { %846 = vperm.xlu1 %1092, %v752_v53  }
 0x217   : > { %v772_v54 = vpop.permute.xlu1 %771 }
 0x218   : > { %v849_v57 = vmul.f32 %v772_v54, %v753_v26 }
 0x219   : > { %v777_v19 = vpop.permute.xlu0 %776 }
 0x21a   : > { %v850_v18 = vmul.f32 %v777_v19, %v754_v55 }
 0x21b   : > { %v782_v58 = vpop.permute.xlu1 %781 }
 0x21c   : > { %v865_v59 = vadd.f32 %v850_v18, %v849_v57  ;;  %v851_v60 = vmul.f32 %v782_v58, %v755_v56  ;;  %v886_v56 = vld [vmem:[%s1559_s4] sm:$0x1] }
 0x21e   : > { %v866_v5 = vadd.f32 %v865_v59, %v851_v60 }
 0x21f   : > { %v787_v62 = vpop.permute.xlu1 %786  ;;  %v792_v0 = vpop.permute.xlu0 %791 }
 0x220   : > { %v852_v1 = vmul.f32 %v787_v62, %v756_v61  ;;  %v853_v21 = vmul.f32 %v792_v0, %v757_v63 }
 0x222   : > { %v867_v9 = vadd.f32 %v866_v5, %v852_v1 }
 0x223   : > { %v797_v3 = vpop.permute.xlu1 %796  ;;  %v802_v7 = vpop.permute.xlu0 %801 }
 0x224   : > { %v868_v20 = vadd.f32 %v867_v9, %v853_v21  ;;  %v854_v6 = vmul.f32 %v797_v3, %v758_v2  ;;  %v855_v12 = vmul.f32 %v802_v7, %v759_v4 }
 0x226   : > { %v869_v11 = vadd.f32 %v868_v20, %v854_v6 }
 0x227   : > { %v807_v15 = vpop.permute.xlu1 %806  ;;  %v812_v27 = vpop.permute.xlu0 %811 }
 0x228   : > { %v870_v28 = vadd.f32 %v869_v11, %v855_v12  ;;  %v856_v29 = vmul.f32 %v807_v15, %v760_v8  ;;  %v857_v23 = vmul.f32 %v812_v27, %v761_v16 }
 0x22a   : > { %v871_v13 = vadd.f32 %v870_v28, %v856_v29 }
 0x22b   : > { %v817_v31 = vpop.permute.xlu1 %816  ;;  %v822_v32 = vpop.permute.xlu0 %821 }
 0x22c   : > { %v872_v22 = vadd.f32 %v871_v13, %v857_v23  ;;  %v858_v33 = vmul.f32 %v817_v31, %v762_v30  ;;  %v859_v37 = vmul.f32 %v822_v32, %v763_v10 }
 0x22e   : > { %v873_v35 = vadd.f32 %v872_v22, %v858_v33 }
 0x22f   : > { %v827_v38 = vpop.permute.xlu1 %826  ;;  %v832_v36 = vpop.permute.xlu0 %831 }
 0x230   : > { %v874_v40 = vadd.f32 %v873_v35, %v859_v37  ;;  %v860_v42 = vmul.f32 %v827_v38, %v764_v34  ;;  %v861_v43 = vmul.f32 %v832_v36, %v765_v39 }
 0x232   : > { %v875_v17 = vadd.f32 %v874_v40, %v860_v42 }
 0x233   : > { %v837_v44 = vpop.permute.xlu1 %836  ;;  %v842_v14 = vpop.permute.xlu0 %841 }
 0x234   : > { %v876_v45 = vadd.f32 %v875_v17, %v861_v43  ;;  %v862_v24 = vmul.f32 %v837_v44, %v766_v25  ;;  %v863_v48 = vmul.f32 %v842_v14, %v767_v41 }
 0x236   : > { %v877_v47 = vadd.f32 %v876_v45, %v862_v24 }
 0x237   : > { %v847_v49 = vpop.permute.xlu1 %846 }
 0x238   : > { %v878_v50 = vadd.f32 %v877_v47, %v863_v48  ;;  %v864_v51 = vmul.f32 %v847_v49, %v768_v46 }
 0x23a   : > { %v879_v52 = vadd.f32 %v878_v50, %v864_v51 }
 0x23c   : > { %v880_v53 = vrot.slane %v879_v52, 4 }
 0x23e   : > { %v881_v26 = vadd.f32 %v880_v53, %v879_v52 }
 0x240   : > { %v882_v54 = vrot.slane %v881_v26, 2 }
 0x242   : > { %v883_v55 = vadd.f32 %v882_v54, %v881_v26 }
 0x244   : > { %v884_v19 = vrot.slane %v883_v55, 1 }
 0x246   : > { %v885_v57 = vadd.f32 %v884_v19, %v883_v55 }
 0x248   : > { %v887_v18 = vadd.f32 %v886_v56, %v885_v57 }
 0x24a   : > { %888 = vst [vmem:[%s236_s29] sm:$0x1] %v887_v18 }
 0x24b   : > { %1116 = shalt.err (!%p1113_p5)
}
 0x24c   : > { %s1117_s15 = scalar_lea.hbm %s1508_s10, 16  ;;  %s1121_s24 = scalar_lea.hbm %s1560_s5, 32 }
 0x24d   : > { %p1118_p6 = scmp.ne.s32.totalorder %s1508_s10, %s1117_s15  ;;  %p1122_p10 = scmp.lt.u32.totalorder %s1508_s10, %s1560_s5 }
 0x24e   : > { %p1123_p11 = scmp.lt.u32.totalorder %s1121_s24, %s1117_s15  ;;  %p1125_p13 = scmp.lt.u32.totalorder %s1117_s15, %s1508_s10 }
 0x24f   : > { %p1119_p7 = pnand %p1118_p6, %p1256_p4 }
 0x250   : > { %p1124_p12 = por %p1123_p11, %p1122_p10 }
 0x251   : > { %p1120_p9 = pneg %p1119_p7 }
 0x252   : > { %p1126_p0 = por %p1125_p13, %p1124_p12 }
 0x254   : > { %p1127_p1 = pnand %p1126_p0, %p1120_p9 }
 0x256   : > { %1130 = shalt.err (!%p1127_p1)
}
 0x257   : > { %1034 = dma.vmem_to_hbm [thread:$0]  (%p1256_p4), %s1510_s7, 16, %s1508_s10, %s890_s11  }
 0x258 PF: > { %p1040_p2 = scmp.ge.s32.totalorder %s1181_s23, 2  ;;  %s914_s29 = sand.u32 1, %s1161_s18  }
 0x259   : > { %s915_s8 = scalar_lea.sflag [#allocation4], %s914_s29 }
 0x25a   : > { %p1037_p3 = pnand %p1040_p2, %p1263_p8 }
 0x25c   : > { %1156 = dma.done.wait (!%p1037_p3), %s915_s8, 16  }
 0x25d   : > { %1158 = vsyncadd (!%p1037_p3), %s915_s8, 4294967280  ;;  %s18_s23 = sadd.s32 1, %s1181_s23   ;;  %s1563_s18 = smov %s1165_s19 }
 0x25e   : > { %p15_p5 = scmp.ge.s32.totalorder %s18_s23, 4   ;;  %s1564_s19 = smov %s1169_s20 }
 0x25f   : > { %s1565_s20 = smov %s1269_s6  ;;  %s1566_s21 = smov %s1177_s22 }
 0x260   : > { %s1567_s22 = smov %s1569_s26  ;;  %17 = sbr.rel (!%p15_p5) target bundleno = 4 (0x4), region = 83 }
 0x267   :  { %919 = vsyncpa [#allocation4], 1 }
 0x268   :  { %921 = vsyncpa [#allocation4 + $0x1], 1 }

</bundles_post_ra>
